<compile_context>
chip_gen: v7x
topology: tpu7x:2x2x1
jax: 0.10.0
libtpu: 0.0.40
codegen_flags: <defaults>
</compile_context>

<pallas_src>
import functools

import jax
import jax.numpy as jnp
from jax.experimental import pallas as pl
from jax.experimental.pallas import tpu as pltpu

_EPS = 1e-5
_TARGET_F32_BLOCK_BYTES = 6 * 1024 * 1024   # per-block f32-equivalent footprint
_VMEM_LIMIT_BYTES = 48 * 1024 * 1024        # scoped VMEM; safe on v5e/v6e/v7x
_FB_RESIDENT_MAX_ROWS = 4096                # (rows, 2) f32 pads to rows*512 B in VMEM


def _cdiv(a: int, b: int) -> int:
    return -(-a // b)


def _round_up(a: int, b: int) -> int:
    return _cdiv(a, b) * b


def _sublane_tile(dtype) -> int:
    # Minimum native sublane tile per element width (f32: 8, bf16: 16, int8/fp8: 32).
    return {4: 8, 2: 16, 1: 32}.get(jnp.dtype(dtype).itemsize, 8)


def _adain_kernel(x_ref, fb_ref, o_ref, *, block_rows, inv_n, fb_resident):
    # x_ref : (br, Lp) block of rows; Lp = lane-padded H*W (pad lanes are zeros)
    # fb_ref: (Rfb, 2) resident table, or (br, 2) per-block sliver; col0=factor, col1=bias
    if fb_resident:
        r0 = pl.program_id(0) * block_rows
        if block_rows % 8 == 0:
            r0 = pl.multiple_of(r0, 8)
        fb = fb_ref[pl.ds(r0, block_rows), :]
    else:
        fb = fb_ref[...]
    factor = fb[:, 0:1]                                         # (br, 1) f32
    bias = fb[:, 1:2]                                           # (br, 1) f32

    x = x_ref[...].astype(jnp.float32)                          # (br, Lp)
    # Single-pass stats; zero pad lanes don't perturb the sums, divisor is true L.
    mean = jnp.sum(x, axis=-1, keepdims=True) * inv_n           # (br, 1)
    ex2 = jnp.sum(x * x, axis=-1, keepdims=True) * inv_n        # (br, 1)
    var = jnp.maximum(ex2 - mean * mean, 0.0)                   # biased variance
    a = jax.lax.rsqrt(var + _EPS) * factor                      # (br, 1)
    b = bias - mean * a                                         # (br, 1)
    o_ref[...] = (x * a + b).astype(o_ref.dtype)


def adain(image: jax.Array, style: jax.Array) -> jax.Array:
    """image: (N, C, H, W); style: (N, 2C) or (N, 2C, 1, 1). Returns (N, C, H, W)."""
    N, C, H, W = image.shape
    style2d = style.reshape(N, -1)
    assert style2d.shape[1] == 2 * C, "style must carry 2*C values per sample"
    dtype = image.dtype

    R = N * C
    L = H * W
    Lp = _round_up(L, 128)                      # lane-dense blocks / stores

    factor = style2d[:, :C].reshape(R, 1)
    bias = style2d[:, C:].reshape(R, 1)
    fb = jnp.concatenate([factor, bias], axis=1).astype(jnp.float32)   # (R, 2)

    x2d = image.reshape(R, L)
    if Lp != L:
        # Zero lane padding: sums are unchanged; the kernel divides by the true L.
        x2d = jnp.pad(x2d, ((0, 0), (0, Lp - L)))

    # ---- choose the row block (sublane-tile aligned, ~6 MiB f32-equivalent) ----
    sub = _sublane_tile(dtype)
    target_rows = max(sub, (_TARGET_F32_BLOCK_BYTES // (Lp * 4)) // sub * sub)
    if R <= target_rows:
        br = R                                   # whole row axis in one block
    else:
        br = target_rows
        # Prefer an exact divisor of R near the target (kills the ragged block).
        if R % sub == 0 and R % br != 0:
            cand = br
            while cand > br // 2 and R % cand != 0:
                cand -= sub
            if cand > br // 2 and R % cand == 0:
                br = cand
    # Give the v7x megacore (2 TensorCores) at least two grid steps when possible.
    if _cdiv(R, br) < 2 and R >= 2 * sub:
        br = _round_up(_cdiv(R, 2), sub)

    n_blocks = _cdiv(R, br)

    # factor/bias table: tiny pad so the resident slice / per-block fetch is exact.
    fb_rows = n_blocks * br
    if fb_rows != R:
        fb = jnp.pad(fb, ((0, fb_rows - R), (0, 0)))
    fb_resident = fb_rows <= _FB_RESIDENT_MAX_ROWS
    if fb_resident:
        fb_spec = pl.BlockSpec((fb_rows, 2), lambda i: (0, 0))   # one DMA, stays in VMEM
    else:
        fb_spec = pl.BlockSpec((br, 2), lambda i: (i, 0))

    kernel = functools.partial(
        _adain_kernel,
        block_rows=br,
        inv_n=1.0 / float(L),
        fb_resident=fb_resident,
    )

    out2d = pl.pallas_call(
        kernel,
        out_shape=jax.ShapeDtypeStruct((R, Lp), dtype),
        grid_spec=pltpu.PrefetchScalarGridSpec(
            num_scalar_prefetch=0,
            grid=(n_blocks,),
            in_specs=[
                pl.BlockSpec((br, Lp), lambda i: (i, 0)),
                fb_spec,
            ],
            out_specs=pl.BlockSpec((br, Lp), lambda i: (i, 0)),
        ),
        compiler_params=pltpu.CompilerParams(
            dimension_semantics=("parallel",),
            vmem_limit_bytes=_VMEM_LIMIT_BYTES,
        ),
    )(x2d, fb)

    if Lp != L:
        out2d = out2d[:, :L]
    return out2d.reshape(N, C, H, W)


def _adain_ref(image, style):
    """Pure-JAX reference mirroring the PyTorch module (f32 math)."""
    N, C, H, W = image.shape
    img = image.astype(jnp.float32)
    style2d = style.reshape(N, -1).astype(jnp.float32)
    factor = style2d[:, :C].reshape(N, C, 1, 1)
    bias = style2d[:, C:].reshape(N, C, 1, 1)
    mean = jnp.mean(img, axis=(2, 3), keepdims=True)
    var = jnp.mean((img - mean) ** 2, axis=(2, 3), keepdims=True)
    normed = (img - mean) / jnp.sqrt(var + _EPS)
    return normed * factor + bias


def _check(image, style, atol, rtol):
    out = jax.block_until_ready(adain(image, style))
    ref = _adain_ref(image, style)
    assert out.shape == image.shape
    assert jnp.allclose(out.astype(jnp.float32), ref, atol=atol, rtol=rtol), (
        f"mismatch: max abs err = {jnp.max(jnp.abs(out.astype(jnp.float32) - ref))}"
    )


if __name__ == "__main__":
    key = jax.random.PRNGKey(0)
    k1, k2, k3, k4, k5, k6, k7, k8 = jax.random.split(key, 8)

    # 1) Baseline small case: (2, 4, 16, 16), style as (N, 2C, 1, 1).
    image = jax.random.normal(k1, (2, 4, 16, 16), dtype=jnp.float32)
    style = jax.random.normal(k2, (2, 8, 1, 1), dtype=jnp.float32)
    _check(image, style, atol=1e-5, rtol=1e-5)

    # 2) Lane-unaligned spatial size (7x7 -> lane pad to 128), style as (N, 2C).
    image = jax.random.normal(k3, (2, 6, 7, 7), dtype=jnp.float32)
    style = jax.random.normal(k4, (2, 12), dtype=jnp.float32)
    _check(image, style, atol=1e-5, rtol=1e-5)

    # 3) Multi-block grid (R = 32 -> two row blocks, exercises the resident fb slice).
    image = jax.random.normal(k5, (4, 8, 16, 16), dtype=jnp.float32)
    style = jax.random.normal(k6, (4, 16, 1, 1), dtype=jnp.float32)
    _check(image, style, atol=1e-5, rtol=1e-5)

    # 4) bf16 input (sublane tile 16, f32 accumulation inside the kernel).
    image = jax.random.normal(k7, (2, 16, 16, 16), dtype=jnp.bfloat16)
    style = jax.random.normal(k8, (2, 32, 1, 1), dtype=jnp.bfloat16)
    _check(image, style, atol=5e-2, rtol=5e-2)

    print("KERNEL_OK")
</pallas_src>

<mosaic_0001>
module attributes {stable_mosaic.version = 11 : i64} {
  func.func @_adain_kernel(%arg0: i32, %arg1: memref<8x256xf32, #tpu.memory_space<vmem>>, %arg2: memref<8x2xf32, #tpu.memory_space<vmem>>, %arg3: memref<8x256xf32, #tpu.memory_space<vmem>>) attributes {dimension_semantics = [#tpu.dimension_semantics<parallel>], iteration_bounds = array<i64: 1>, scalar_prefetch = 0 : i64, scratch_operands = 0 : i64, tpu.core_type = #tpu.core_type<tc>, window_params = [{transform_indices = @transform_0, window_bounds = array<i64: 8, 256>}, {pipeline_mode = #tpu.pipeline_mode<synchronous>, transform_indices = @transform_1, window_bounds = array<i64: 8, 2>}, {transform_indices = @transform_2, window_bounds = array<i64: 8, 256>}]} {
    %c8_i32 = arith.constant 8 : i32
    %0 = arith.muli %arg0, %c8_i32 : i32
    %1 = tpu.assume_multiple %0, 8 : i32
    %2 = arith.index_cast %1 : i32 to index
    %c0 = arith.constant 0 : index
    %3 = vector.load %arg2[%2, %c0] : memref<8x2xf32, #tpu.memory_space<vmem>>, vector<8x2xf32>
    %4 = vector.extract_strided_slice %3 {offsets = [0, 0], sizes = [8, 1], strides = [1, 1]} : vector<8x2xf32> to vector<8x1xf32>
    %5 = vector.extract_strided_slice %3 {offsets = [0, 1], sizes = [8, 1], strides = [1, 1]} : vector<8x2xf32> to vector<8x1xf32>
    %c0_0 = arith.constant 0 : index
    %c0_1 = arith.constant 0 : index
    %6 = vector.load %arg1[%c0_0, %c0_1] : memref<8x256xf32, #tpu.memory_space<vmem>>, vector<8x256xf32>
    %cst = arith.constant dense<0.000000e+00> : vector<8xf32>
    %7 = vector.multi_reduction <add>, %6, %cst [1] : vector<8x256xf32> to vector<8xf32>
    %8 = vector.shape_cast %7 : vector<8xf32> to vector<8x1xf32>
    %cst_2 = arith.constant 3.906250e-03 : f32
    %9 = vector.broadcast %cst_2 : f32 to vector<8x1xf32>
    %10 = arith.mulf %8, %9 : vector<8x1xf32>
    %11 = arith.mulf %6, %6 : vector<8x256xf32>
    %cst_3 = arith.constant dense<0.000000e+00> : vector<8xf32>
    %12 = vector.multi_reduction <add>, %11, %cst_3 [1] : vector<8x256xf32> to vector<8xf32>
    %13 = vector.shape_cast %12 : vector<8xf32> to vector<8x1xf32>
    %cst_4 = arith.constant 3.906250e-03 : f32
    %14 = vector.broadcast %cst_4 : f32 to vector<8x1xf32>
    %15 = arith.mulf %13, %14 : vector<8x1xf32>
    %16 = arith.mulf %10, %10 : vector<8x1xf32>
    %17 = arith.subf %15, %16 : vector<8x1xf32>
    %cst_5 = arith.constant 0.000000e+00 : f32
    %18 = vector.broadcast %cst_5 : f32 to vector<8x1xf32>
    %19 = arith.maximumf %17, %18 : vector<8x1xf32>
    %cst_6 = arith.constant 9.99999974E-6 : f32
    %20 = vector.broadcast %cst_6 : f32 to vector<8x1xf32>
    %21 = arith.addf %19, %20 : vector<8x1xf32>
    %22 = math.rsqrt %21 : vector<8x1xf32>
    %23 = arith.mulf %22, %4 : vector<8x1xf32>
    %24 = arith.mulf %10, %23 : vector<8x1xf32>
    %25 = arith.subf %5, %24 : vector<8x1xf32>
    %26 = vector.broadcast %23 : vector<8x1xf32> to vector<8x256xf32>
    %27 = arith.mulf %6, %26 : vector<8x256xf32>
    %28 = vector.broadcast %25 : vector<8x1xf32> to vector<8x256xf32>
    %29 = arith.addf %27, %28 : vector<8x256xf32>
    %c0_7 = arith.constant 0 : index
    %c0_8 = arith.constant 0 : index
    %30 = vector.load %arg3[%c0_7, %c0_8] : memref<8x256xf32, #tpu.memory_space<vmem>>, vector<8x256xf32>
    tpu.vector_store %arg3[%c0_7, %c0_8], %29 {strides = array<i32>} : memref<8x256xf32, #tpu.memory_space<vmem>>, vector<8x256xf32>,
    return
  }
  func.func @transform_0(%arg0: i32) -> (i32, i32) {
    %c0_i32 = arith.constant 0 : i32
    %c0_i32_0 = arith.constant 0 : i32
    return %arg0, %c0_i32 : i32, i32
  }
  func.func @transform_1(%arg0: i32) -> (i32, i32) {
    %c0_i32 = arith.constant 0 : i32
    %c0_i32_0 = arith.constant 0 : i32
    %c0_i32_1 = arith.constant 0 : i32
    return %c0_i32, %c0_i32_0 : i32, i32
  }
  func.func @transform_2(%arg0: i32) -> (i32, i32) {
    %c0_i32 = arith.constant 0 : i32
    %c0_i32_0 = arith.constant 0 : i32
    return %arg0, %c0_i32 : i32, i32
  }
}

</mosaic_0001>

<bundles_post_ra>
// kernel: tpu_custom_call.1
= control target key start
LH: loop header
LB: loop body
LE: loop exit
PB: predicated region body
PF: predicated region fallthrough
CT: control target
= control target key end

     0   :  { %7 = vsyncpa [#allocation3], 0  ;;  %s186_s0 = inlined_call_operand.hbm [shape: f32[8,256], index: 0, kind: input, shape index: {}]   ;;  %s187_s1 = inlined_call_operand.vmem [shape: f32[8,2], index: 1, kind: input, shape index: {}]   ;;  %s188_s2 = inlined_call_operand.hbm [shape: f32[8,256], index: 2, kind: output, shape index: {}]  }
   0x1   :  { %8 = vsyncpa [#allocation4], 0  ;;  %s139_s9 = smov [#allocation2]   ;;  %s91_s13 = scalar_lea.hbm %s186_s0, 256 }
   0x2   :  { %s15_s10 = sshll.u32 %s139_s9, 4  ;;  %p92_p0 = scmp.ne.s32.totalorder %s186_s0, %s91_s13  ;;  %s16_s10 = int_to_ptr.vmem [resolvable:$true] %s15_s10 }
   0x3   :  { %p95_p1 = scmp.lt.u32.totalorder %s91_s13, %s186_s0 }
   0x5   :  { %p97_p2 = pnand %p95_p1, %p92_p0 }
   0x7   :  { %100 = shalt.err (!%p97_p2)
}
   0x8   :  { %s101_s18 = scalar_lea.vmem %s16_s10, 256  ;;  %p106_p4 = scmp.lt.s32.totalorder %s16_s10, %s16_s10 }
   0x9   :  { %p102_p3 = scmp.ne.s32.totalorder %s16_s10, %s101_s18  ;;  %p107_p5 = scmp.lt.s32.totalorder %s101_s18, %s101_s18 }
   0xb   :  { %p108_p6 = por %p107_p5, %p106_p4 }
   0xd   :  { %p109_p7 = pnand %p108_p6, %p102_p3 }
   0xf   :  { %112 = shalt.err (!%p109_p7)
}
  0x10   :  { %18 = dma.hbm_to_vmem [thread:$0]  %s186_s0, 256, %s16_s10, [#allocation3]  }
  0x11   :  { %135 = dma.done.wait [#allocation3], 256  }
  0x12   :  { %136 = vsyncadd [#allocation3], 4294967040  ;;  %v27_v0 = vld [vmem:[#allocation2] sm:$0xff]  ;;  %v28_v1 = vld [vmem:[#allocation2 + $0x8] sm:$0xff]  ;;  %v140_v6 = vmov 0   ;;  %v141_v15 = vmov 1  }
  0x13   :  { %v29_v2 = vadd.f32 %v28_v1, %v27_v0  ;;  %v33_v3 = vmul.f32 %v27_v0, %v27_v0  ;;  %v34_v4 = vmul.f32 %v28_v1, %v28_v1  ;;  %87 = vset.pattern.permute.xlu1 %v140_v6  ;;  %88 = vset.pattern.permute.xlu0 %v141_v15  ;;  %v26_v16 = vld [vmem:[%s187_s1] sm:$0xff]  ;;  %s142_s22 = smov 1   ;;  %s143_s23 = smov [#allocation5]  }
  0x14   :  { %s73_s24 = sshll.u32 %s143_s23, 4  ;;  %s74_s24 = int_to_ptr.vmem [resolvable:$true] %s73_s24 }
  0x15   :  { %30 = vadd.xlane.f32.xlu0 %v29_v2  ;;  %v35_v5 = vadd.f32 %v34_v4, %v33_v3  ;;  %s113_s1 = scalar_lea.vmem %s74_s24, 256  ;;  %p118_p9 = scmp.lt.s32.totalorder %s74_s24, %s74_s24 }
  0x16   :  { %p114_p8 = scmp.ne.s32.totalorder %s74_s24, %s113_s1  ;;  %p119_p10 = scmp.lt.s32.totalorder %s113_s1, %s113_s1 }
  0x18   :  { %p120_p11 = por %p119_p10, %p118_p9 }
  0x19   :  { %36 = vadd.xlane.f32.xlu0 %v35_v5 }
  0x1a   :  { %p121_p12 = pnand %p120_p11, %p114_p8 }
  0xa2   :  { %v31_v7 = vpop.xlane.xlu0 %30 }
  0xa3   :  { %v32_v8 = vmul.f32 0.00390625, %v31_v7 }
  0xa5   :  { %v39_v10 = vmul.f32 %v32_v8, %v32_v8 }
  0xa6   :  { %v37_v9 = vpop.xlane.xlu0 %36 }
  0xa7   :  { %v38_v11 = vmul.f32 0.00390625, %v37_v9 }
  0xa9   :  { %v40_v12 = vsub.f32 %v38_v11, %v39_v10 }
  0xab   :  { %v41_v13 = vmax.f32 %v40_v12, 0.0 }
  0xad   :  { %v42_v14 = vadd.f32 1e-05, %v41_v13 }
  0xaf   :  { %89 = vrsqrt.f32 %v42_v14 }
  0xb9   :  { %v90_v17 = vpop.eup %89 }
  0xba   :  { %v44_v18 = vmul.f32 %v90_v17, %v26_v16 }
  0xbc   :  { %v45_v19 = vmul.f32 %v44_v18, %v32_v8 }
  0xbe   :  { %47 = vrot.lane.b32.xlu1 %v45_v19, %s142_s22 }
  0xc2   :  { %53 = vperm.xlu1 %87, %v44_v18  }
 0x130   :  { %v48_v20 = vpop.permute.xlu1 %47 }
 0x131   :  { %v50_v21 = vsub.f32 %v26_v16, %v48_v20 }
 0x133   :  { %60 = vperm.xlu0 %88, %v50_v21  }
 0x141   :  { %v54_v22 = vpop.permute.xlu1 %53 }
 0x142   :  { %v56_v23 = vmul.f32 %v54_v22, %v27_v0  ;;  %v57_v24 = vmul.f32 %v54_v22, %v28_v1 }
 0x1b2   :  { %v61_v25 = vpop.permute.xlu0 %60 }
 0x1b3   :  { %v63_v26 = vadd.f32 %v61_v25, %v56_v23  ;;  %v64_v27 = vadd.f32 %v61_v25, %v57_v24 }
 0x1b5   :  { %65 = vst [vmem:[#allocation5] sm:$0xff] %v63_v26  ;;  %66 = vst [vmem:[#allocation5 + $0x8] sm:$0xff] %v64_v27 }
 0x1b6   :  { %124 = shalt.err (!%p121_p12)
}
 0x1b7   :  { %s125_s27 = scalar_lea.hbm %s188_s2, 256 }
 0x1b8   :  { %p126_p13 = scmp.ne.s32.totalorder %s188_s2, %s125_s27  ;;  %p129_p0 = scmp.lt.u32.totalorder %s125_s27, %s188_s2 }
 0x1ba   :  { %p131_p1 = pnand %p129_p0, %p126_p13 }
 0x1bc   :  { %134 = shalt.err (!%p131_p1)
}
 0x1bd   :  { %76 = dma.vmem_to_hbm [thread:$0]  %s74_s24, 256, %s188_s2, [#allocation4]  }
 0x1be   :  { %137 = dma.done.wait [#allocation4], 256  }
 0x1bf   :  { %138 = vsyncadd [#allocation4], 4294967040 }
 0x1c0   :  { %80 = vsyncpa [#allocation3], 1 }
 0x1c1   :  { %81 = vsyncpa [#allocation4], 1 }

</bundles_post_ra>
